<compile_context>
chip_gen: v7x
topology: tpu7x:2x2x1
jax: 0.10.0
libtpu: 0.0.40
codegen_flags: <defaults>
</compile_context>

<pallas_src>
import functools

import jax
import jax.numpy as jnp
from jax.experimental import pallas as pl
from jax.experimental.pallas import tpu as pltpu

_LANE = 128
_SUBLANE = 8


def _round_up(n, m):
    return (n + m - 1) // m * m


def _pad2d(a, rows, cols, value=0.0):
    r, c = a.shape
    return jnp.pad(a, ((0, rows - r), (0, cols - c)), constant_values=value)


def _apply_act(y, act):
    if act == "relu":
        return jnp.maximum(y, 0.0)
    if act == "leaky_relu":
        return jnp.where(y > 0, y, 0.01 * y)  # PyTorch default negative_slope=0.01
    if act == "silu":
        return y * jax.nn.sigmoid(y)
    raise ValueError(act)


def _mlp_model_kernel(*refs, num_layers, act, eps, task_type, compute_dtype):
    """Fused: LayerNorm -> (Linear -> Dropout(id) -> Act)*(L-1) -> Linear -> head."""
    x_ref, gamma_ref, beta_ref, scale_ref, shift_ref = refs[:5]
    wb = refs[5:5 + 2 * num_layers]
    o_ref = refs[5 + 2 * num_layers]

    # --- LayerNorm (two-pass variance, f32) on the UNPADDED (tb, in_features) tile. ---
    x = x_ref[...].astype(jnp.float32)
    mean = jnp.mean(x, axis=-1, keepdims=True)
    xc = x - mean
    var = jnp.mean(xc * xc, axis=-1, keepdims=True)
    h = xc * jax.lax.rsqrt(var + jnp.float32(eps))
    h = h * gamma_ref[...] + beta_ref[...]

    # --- MLP: all layers fused, activations never leave VMEM/vregs. ---
    for l in range(num_layers):
        w = wb[2 * l][...]                                  # (K, N_pad), compute_dtype
        b = wb[2 * l + 1][...]                              # (1, N_pad), f32
        y = jnp.dot(h.astype(compute_dtype), w, preferred_element_type=jnp.float32) + b
        if l < num_layers - 1:
            # TODO(synk): training-mode dropout would mask here; eval mode = identity.
            y = _apply_act(y, act)                          # act(0) == 0 -> padded cols stay 0
        h = y

    # --- Output head. ---
    if task_type == "classification":
        h = jax.nn.sigmoid(h)
    else:
        h = h * scale_ref[...] + shift_ref[...]             # pred * std + mean
    o_ref[...] = h.astype(o_ref.dtype)


def mlp_model_forward(x, ln_gamma, ln_beta, params, *, act="leaky_relu",
                      task_type="regression", mean=None, std=None, ln_eps=1e-5,
                      compute_dtype=jnp.bfloat16, out_dtype=jnp.float32,
                      batch_tile=512, return_padded=False):
    """Run the fused MLPModel forward. x: (batch, in_features)."""
    batch, in_features = x.shape
    out_features = params[-1][0].shape[1]
    num_layers = len(params)
    out_pad = _round_up(out_features, _LANE)

    # --- Balanced, megacore-friendly batch tiling (tb multiple of 8). ---
    batch_tile = max(_SUBLANE, _round_up(int(batch_tile), _SUBLANE))
    n_tiles = pl.cdiv(batch, batch_tile)
    if n_tiles < 2 and batch >= 2 * _SUBLANE:
        n_tiles = 2          # give the "parallel" axis >=2 steps (v7x megacore)
    tb = _round_up(pl.cdiv(batch, n_tiles), _SUBLANE)
    b_pad = _round_up(batch, tb)

    # --- Operands: x streamed unpadded in features; weights padded lane-dense only. ---
    x_p = x.astype(jnp.float32)
    if b_pad != batch:
        x_p = jnp.pad(x_p, ((0, b_pad - batch), (0, 0)))
    gamma_p = ln_gamma.reshape(1, -1).astype(jnp.float32)
    beta_p = ln_beta.reshape(1, -1).astype(jnp.float32)

    std = jnp.ones((1,), jnp.float32) if std is None else jnp.asarray(std, jnp.float32)
    mean = jnp.zeros((1,), jnp.float32) if mean is None else jnp.asarray(mean, jnp.float32)
    scale_p = _pad2d(jnp.broadcast_to(std.reshape(1, -1), (1, out_features)), 1, out_pad, 1.0)
    shift_p = _pad2d(jnp.broadcast_to(mean.reshape(1, -1), (1, out_features)), 1, out_pad, 0.0)

    padded_wb, n_pads = [], []
    for li, (w, b) in enumerate(params):
        k, n = w.shape
        kp = k if li == 0 else _round_up(k, _LANE)   # layer-0 K stays unpadded (== in_features)
        np_ = _round_up(n, _LANE)
        padded_wb.append(_pad2d(w.astype(jnp.float32), kp, np_).astype(compute_dtype))
        padded_wb.append(_pad2d(b.reshape(1, -1).astype(jnp.float32), 1, np_))
        n_pads.append(np_)

    # --- Cost estimate from REAL (unpadded) dims. ---
    dsize = jnp.dtype(compute_dtype).itemsize
    real_flops = sum(2 * batch * w.shape[0] * w.shape[1] for (w, _) in params)
    transc = batch                                          # rsqrt in LayerNorm
    if act == "silu":
        transc += batch * sum(w.shape[1] for (w, _) in params[:-1])
    if task_type == "classification":
        transc += batch * out_features
    real_bytes = (batch * in_features * 4
                  + sum(w.size * dsize + b.size * 4 for (w, b) in params)
                  + batch * out_features * jnp.dtype(out_dtype).itemsize)

    # --- VMEM budget (no double-counting; cap at 0.75 * physical VMEM). ---
    param_bytes = (sum(a.nbytes for a in padded_wb) + gamma_p.nbytes + beta_p.nbytes
                   + scale_p.nbytes + shift_p.nbytes)
    x_tile_bytes = tb * in_features * 4
    out_tile_bytes = tb * out_pad * jnp.dtype(out_dtype).itemsize
    max_w = max([in_features] + n_pads)
    work_bytes = 4 * tb * max_w * 4                         # in-kernel intermediates headroom
    try:
        vmem_cap = int(0.75 * pltpu.get_tpu_info().vmem_capacity_bytes)
    except Exception:
        vmem_cap = 48 << 20

    kernel = functools.partial(
        _mlp_model_kernel, num_layers=num_layers, act=act,
        eps=ln_eps, task_type=task_type, compute_dtype=compute_dtype)
    args = (x_p, gamma_p, beta_p, scale_p, shift_p, *padded_wb)

    def _build(single_buffer_consts):
        const_kw = {"pipeline_mode": pl.Buffered(1)} if single_buffer_consts else {}
        vec_in = pl.BlockSpec((1, in_features), lambda i: (0, 0), **const_kw)
        vec_out = pl.BlockSpec((1, out_pad), lambda i: (0, 0), **const_kw)
        in_specs = [pl.BlockSpec((tb, in_features), lambda i: (i, 0)),  # streamed batch tiles
                    vec_in, vec_in, vec_out, vec_out]
        in_specs += [pl.BlockSpec(a.shape, lambda i: (0, 0), **const_kw) for a in padded_wb]
        n_buf = 1 if single_buffer_consts else 2
        need = (n_buf * param_bytes + 2 * (x_tile_bytes + out_tile_bytes)
                + work_bytes + (4 << 20))
        vmem_limit = max(8 << 20, min(vmem_cap, need))
        return pl.pallas_call(
            kernel,
            out_shape=jax.ShapeDtypeStruct((b_pad, out_pad), out_dtype),
            grid=(b_pad // tb,),
            in_specs=in_specs,
            out_specs=pl.BlockSpec((tb, out_pad), lambda i: (i, 0)),
            compiler_params=pltpu.CompilerParams(
                dimension_semantics=("parallel",),
                vmem_limit_bytes=int(vmem_limit)),
            cost_estimate=pl.CostEstimate(
                flops=int(real_flops), transcendentals=int(transc),
                bytes_accessed=int(real_bytes)),
        )

    try:
        out_p = _build(True)(*args)
    except Exception:
        # Fallback if pl.Buffered(1) single-buffering is rejected by this jax build.
        out_p = _build(False)(*args)

    if return_padded:
        return out_p
    return out_p[:batch, :out_features]


def init_mlp_params(key, layer_num, in_size, hidden_size, out_size):
    """PyTorch nn.Linear-style init; weights stored as (in, out), bias as (out,)."""
    dims = []
    for layer_id in range(layer_num):
        if layer_id == 0:
            dims.append((in_size, hidden_size))
        elif layer_id < layer_num - 1:
            dims.append((hidden_size, hidden_size))
        else:
            dims.append((hidden_size, out_size))
    params = []
    for (fan_in, fan_out) in dims:
        key, kw, kb = jax.random.split(key, 3)
        bound = 1.0 / jnp.sqrt(jnp.float32(fan_in))
        w = jax.random.uniform(kw, (fan_in, fan_out), jnp.float32, -bound, bound)
        b = jax.random.uniform(kb, (fan_out,), jnp.float32, -bound, bound)
        params.append((w, b))
    return params


def _reference(x, ln_gamma, ln_beta, params, mean, std, act="leaky_relu",
               task_type="regression", eps=1e-5):
    mu = jnp.mean(x, axis=-1, keepdims=True)
    var = jnp.mean((x - mu) ** 2, axis=-1, keepdims=True)
    h = (x - mu) * jax.lax.rsqrt(var + eps) * ln_gamma + ln_beta
    for i, (w, b) in enumerate(params):
        h = h @ w + b.reshape(1, -1)
        if i < len(params) - 1:
            if act == "leaky_relu":
                h = jnp.where(h > 0, h, 0.01 * h)
            elif act == "relu":
                h = jnp.maximum(h, 0.0)
            else:
                h = h * jax.nn.sigmoid(h)
    if task_type == "classification":
        return jax.nn.sigmoid(h)
    return h * std + mean


if __name__ == "__main__":
    # Small shapes consistent with MLPModel: hidden_channels=32, hidden_size=-1 -> 32,
    # MLP hidden = 32 // 2 = 16, layer_num=3, num_tasks=8, act='leaky_relu', regression.
    # Original module does x = z.view(bs, -1); we build the flattened x directly.
    task_type = "regression"
    num_tasks = 8
    hidden_channels = 32
    layer_num = 3
    mlp_hidden = hidden_channels // 2
    act = "leaky_relu"
    batch = 4

    key = jax.random.PRNGKey(0)
    key, kx = jax.random.split(key)
    x = jax.random.normal(kx, (batch, hidden_channels), jnp.float32)

    ln_gamma = jnp.ones((hidden_channels,), jnp.float32)
    ln_beta = jnp.zeros((hidden_channels,), jnp.float32)
    params = init_mlp_params(key, layer_num, hidden_channels, mlp_hidden, num_tasks)
    mean = jnp.array([0.0], jnp.float32)
    std = jnp.array([1.0], jnp.float32)

    ref = _reference(x, ln_gamma, ln_beta, params, mean, std, act, task_type)

    # f32 matmul path -> tight tolerance.
    out = mlp_model_forward(x, ln_gamma, ln_beta, params, act=act, task_type=task_type,
                            mean=mean, std=std, compute_dtype=jnp.float32)
    jax.block_until_ready(out)
    assert out.shape == (batch, num_tasks), out.shape
    assert jnp.allclose(out, ref, atol=1e-4, rtol=1e-4), float(jnp.max(jnp.abs(out - ref)))

    # Default bf16-input / f32-accumulate MXU fast path, looser tolerance.
    out_bf16 = mlp_model_forward(x, ln_gamma, ln_beta, params, act=act, task_type=task_type,
                                 mean=mean, std=std)
    jax.block_until_ready(out_bf16)
    assert jnp.allclose(out_bf16, ref, atol=1e-1, rtol=1e-1)

    # Larger batch: exercises balanced multi-step "parallel" grid + row padding.
    batch2 = 20
    key, kx2 = jax.random.split(key)
    x2 = jax.random.normal(kx2, (batch2, hidden_channels), jnp.float32)
    ref2 = _reference(x2, ln_gamma, ln_beta, params, mean, std, act, task_type)
    out2 = mlp_model_forward(x2, ln_gamma, ln_beta, params, act=act, task_type=task_type,
                             mean=mean, std=std, compute_dtype=jnp.float32, batch_tile=512)
    jax.block_until_ready(out2)
    assert out2.shape == (batch2, num_tasks), out2.shape
    assert jnp.allclose(out2, ref2, atol=1e-4, rtol=1e-4), float(jnp.max(jnp.abs(out2 - ref2)))

    print("KERNEL_OK")
</pallas_src>

<mosaic_0001>
module attributes {stable_mosaic.version = 11 : i64} {
  func.func @_mlp_model_kernel(%arg0: i32, %arg1: memref<8x32xf32, #tpu.memory_space<vmem>>, %arg2: memref<1x32xf32, #tpu.memory_space<vmem>>, %arg3: memref<1x32xf32, #tpu.memory_space<vmem>>, %arg4: memref<1x128xf32, #tpu.memory_space<vmem>>, %arg5: memref<1x128xf32, #tpu.memory_space<vmem>>, %arg6: memref<32x128xf32, #tpu.memory_space<vmem>>, %arg7: memref<1x128xf32, #tpu.memory_space<vmem>>, %arg8: memref<128x128xf32, #tpu.memory_space<vmem>>, %arg9: memref<1x128xf32, #tpu.memory_space<vmem>>, %arg10: memref<128x128xf32, #tpu.memory_space<vmem>>, %arg11: memref<1x128xf32, #tpu.memory_space<vmem>>, %arg12: memref<8x128xf32, #tpu.memory_space<vmem>>) attributes {dimension_semantics = [#tpu.dimension_semantics<parallel>], iteration_bounds = array<i64: 1>, scalar_prefetch = 0 : i64, scratch_operands = 0 : i64, tpu.core_type = #tpu.core_type<tc>, window_params = [{transform_indices = @transform_0, window_bounds = array<i64: 8, 32>}, {pipeline_mode = #tpu.pipeline_mode<synchronous>, transform_indices = @transform_1, window_bounds = array<i64: 1, 32>}, {pipeline_mode = #tpu.pipeline_mode<synchronous>, transform_indices = @transform_2, window_bounds = array<i64: 1, 32>}, {pipeline_mode = #tpu.pipeline_mode<synchronous>, transform_indices = @transform_3, window_bounds = array<i64: 1, 128>}, {pipeline_mode = #tpu.pipeline_mode<synchronous>, transform_indices = @transform_4, window_bounds = array<i64: 1, 128>}, {pipeline_mode = #tpu.pipeline_mode<synchronous>, transform_indices = @transform_5, window_bounds = array<i64: 32, 128>}, {pipeline_mode = #tpu.pipeline_mode<synchronous>, transform_indices = @transform_6, window_bounds = array<i64: 1, 128>}, {pipeline_mode = #tpu.pipeline_mode<synchronous>, transform_indices = @transform_7, window_bounds = array<i64: 128, 128>}, {pipeline_mode = #tpu.pipeline_mode<synchronous>, transform_indices = @transform_8, window_bounds = array<i64: 1, 128>}, {pipeline_mode = #tpu.pipeline_mode<synchronous>, transform_indices = @transform_9, window_bounds = array<i64: 128, 128>}, {pipeline_mode = #tpu.pipeline_mode<synchronous>, transform_indices = @transform_10, window_bounds = array<i64: 1, 128>}, {transform_indices = @transform_11, window_bounds = array<i64: 8, 128>}]} {
    %c0 = arith.constant 0 : index
    %c0_0 = arith.constant 0 : index
    %0 = vector.load %arg1[%c0, %c0_0] : memref<8x32xf32, #tpu.memory_space<vmem>>, vector<8x32xf32>
    %cst = arith.constant dense<0.000000e+00> : vector<8xf32>
    %1 = vector.multi_reduction <add>, %0, %cst [1] : vector<8x32xf32> to vector<8xf32>
    %2 = vector.shape_cast %1 : vector<8xf32> to vector<8x1xf32>
    %cst_1 = arith.constant 3.200000e+01 : f32
    %3 = vector.broadcast %cst_1 : f32 to vector<8x1xf32>
    %4 = arith.divf %2, %3 : vector<8x1xf32>
    %5 = vector.broadcast %4 : vector<8x1xf32> to vector<8x32xf32>
    %6 = arith.subf %0, %5 : vector<8x32xf32>
    %7 = arith.mulf %6, %6 : vector<8x32xf32>
    %cst_2 = arith.constant dense<0.000000e+00> : vector<8xf32>
    %8 = vector.multi_reduction <add>, %7, %cst_2 [1] : vector<8x32xf32> to vector<8xf32>
    %9 = vector.shape_cast %8 : vector<8xf32> to vector<8x1xf32>
    %cst_3 = arith.constant 3.200000e+01 : f32
    %10 = vector.broadcast %cst_3 : f32 to vector<8x1xf32>
    %11 = arith.divf %9, %10 : vector<8x1xf32>
    %cst_4 = arith.constant 9.99999974E-6 : f32
    %12 = vector.broadcast %cst_4 : f32 to vector<8x1xf32>
    %13 = arith.addf %11, %12 : vector<8x1xf32>
    %14 = math.rsqrt %13 : vector<8x1xf32>
    %15 = vector.broadcast %14 : vector<8x1xf32> to vector<8x32xf32>
    %16 = arith.mulf %6, %15 : vector<8x32xf32>
    %c0_5 = arith.constant 0 : index
    %c0_6 = arith.constant 0 : index
    %17 = vector.load %arg2[%c0_5, %c0_6] : memref<1x32xf32, #tpu.memory_space<vmem>>, vector<1x32xf32>
    %18 = vector.broadcast %17 : vector<1x32xf32> to vector<8x32xf32>
    %19 = arith.mulf %16, %18 : vector<8x32xf32>
    %c0_7 = arith.constant 0 : index
    %c0_8 = arith.constant 0 : index
    %20 = vector.load %arg3[%c0_7, %c0_8] : memref<1x32xf32, #tpu.memory_space<vmem>>, vector<1x32xf32>
    %21 = vector.broadcast %20 : vector<1x32xf32> to vector<8x32xf32>
    %22 = arith.addf %19, %21 : vector<8x32xf32>
    %c0_9 = arith.constant 0 : index
    %c0_10 = arith.constant 0 : index
    %23 = vector.load %arg6[%c0_9, %c0_10] : memref<32x128xf32, #tpu.memory_space<vmem>>, vector<32x128xf32>
    %c0_11 = arith.constant 0 : index
    %c0_12 = arith.constant 0 : index
    %24 = vector.load %arg7[%c0_11, %c0_12] : memref<1x128xf32, #tpu.memory_space<vmem>>, vector<1x128xf32>
    %cst_13 = arith.constant dense<0.000000e+00> : vector<8x128xf32>
    %25 = tpu.matmul %22, %23, %cst_13 {dimension_numbers = #tpu.dot_dimension_numbers<[1], [0], [0], [1], [0, 0, 1, 1], [], []>} : vector<8x32xf32>, vector<32x128xf32>, vector<8x128xf32> -> vector<8x128xf32>
    %26 = vector.broadcast %24 : vector<1x128xf32> to vector<8x128xf32>
    %27 = arith.addf %25, %26 : vector<8x128xf32>
    %cst_14 = arith.constant 0.000000e+00 : f32
    %28 = vector.broadcast %cst_14 : f32 to vector<8x128xf32>
    %29 = arith.cmpf ogt, %27, %28 : vector<8x128xf32>
    %cst_15 = arith.constant 0.00999999977 : f32
    %30 = vector.broadcast %cst_15 : f32 to vector<8x128xf32>
    %31 = arith.mulf %30, %27 : vector<8x128xf32>
    %32 = arith.select %29, %27, %31 : vector<8x128xi1>, vector<8x128xf32>
    %c0_16 = arith.constant 0 : index
    %c0_17 = arith.constant 0 : index
    %33 = vector.load %arg8[%c0_16, %c0_17] : memref<128x128xf32, #tpu.memory_space<vmem>>, vector<128x128xf32>
    %c0_18 = arith.constant 0 : index
    %c0_19 = arith.constant 0 : index
    %34 = vector.load %arg9[%c0_18, %c0_19] : memref<1x128xf32, #tpu.memory_space<vmem>>, vector<1x128xf32>
    %cst_20 = arith.constant dense<0.000000e+00> : vector<8x128xf32>
    %35 = tpu.matmul %32, %33, %cst_20 {dimension_numbers = #tpu.dot_dimension_numbers<[1], [0], [0], [1], [0, 0, 1, 1], [], []>} : vector<8x128xf32>, vector<128x128xf32>, vector<8x128xf32> -> vector<8x128xf32>
    %36 = vector.broadcast %34 : vector<1x128xf32> to vector<8x128xf32>
    %37 = arith.addf %35, %36 : vector<8x128xf32>
    %cst_21 = arith.constant 0.000000e+00 : f32
    %38 = vector.broadcast %cst_21 : f32 to vector<8x128xf32>
    %39 = arith.cmpf ogt, %37, %38 : vector<8x128xf32>
    %cst_22 = arith.constant 0.00999999977 : f32
    %40 = vector.broadcast %cst_22 : f32 to vector<8x128xf32>
    %41 = arith.mulf %40, %37 : vector<8x128xf32>
    %42 = arith.select %39, %37, %41 : vector<8x128xi1>, vector<8x128xf32>
    %c0_23 = arith.constant 0 : index
    %c0_24 = arith.constant 0 : index
    %43 = vector.load %arg10[%c0_23, %c0_24] : memref<128x128xf32, #tpu.memory_space<vmem>>, vector<128x128xf32>
    %c0_25 = arith.constant 0 : index
    %c0_26 = arith.constant 0 : index
    %44 = vector.load %arg11[%c0_25, %c0_26] : memref<1x128xf32, #tpu.memory_space<vmem>>, vector<1x128xf32>
    %cst_27 = arith.constant dense<0.000000e+00> : vector<8x128xf32>
    %45 = tpu.matmul %42, %43, %cst_27 {dimension_numbers = #tpu.dot_dimension_numbers<[1], [0], [0], [1], [0, 0, 1, 1], [], []>} : vector<8x128xf32>, vector<128x128xf32>, vector<8x128xf32> -> vector<8x128xf32>
    %46 = vector.broadcast %44 : vector<1x128xf32> to vector<8x128xf32>
    %47 = arith.addf %45, %46 : vector<8x128xf32>
    %c0_28 = arith.constant 0 : index
    %c0_29 = arith.constant 0 : index
    %48 = vector.load %arg4[%c0_28, %c0_29] : memref<1x128xf32, #tpu.memory_space<vmem>>, vector<1x128xf32>
    %49 = vector.broadcast %48 : vector<1x128xf32> to vector<8x128xf32>
    %50 = arith.mulf %47, %49 : vector<8x128xf32>
    %c0_30 = arith.constant 0 : index
    %c0_31 = arith.constant 0 : index
    %51 = vector.load %arg5[%c0_30, %c0_31] : memref<1x128xf32, #tpu.memory_space<vmem>>, vector<1x128xf32>
    %52 = vector.broadcast %51 : vector<1x128xf32> to vector<8x128xf32>
    %53 = arith.addf %50, %52 : vector<8x128xf32>
    %c0_32 = arith.constant 0 : index
    %c0_33 = arith.constant 0 : index
    %54 = vector.load %arg12[%c0_32, %c0_33] : memref<8x128xf32, #tpu.memory_space<vmem>>, vector<8x128xf32>
    tpu.vector_store %arg12[%c0_32, %c0_33], %53 {strides = array<i32>} : memref<8x128xf32, #tpu.memory_space<vmem>>, vector<8x128xf32>,
    return
  }
  func.func @transform_0(%arg0: i32) -> (i32, i32) {
    %c0_i32 = arith.constant 0 : i32
    %c0_i32_0 = arith.constant 0 : i32
    return %arg0, %c0_i32 : i32, i32
  }
  func.func @transform_1(%arg0: i32) -> (i32, i32) {
    %c0_i32 = arith.constant 0 : i32
    %c0_i32_0 = arith.constant 0 : i32
    %c0_i32_1 = arith.constant 0 : i32
    return %c0_i32, %c0_i32_0 : i32, i32
  }
  func.func @transform_2(%arg0: i32) -> (i32, i32) {
    %c0_i32 = arith.constant 0 : i32
    %c0_i32_0 = arith.constant 0 : i32
    %c0_i32_1 = arith.constant 0 : i32
    return %c0_i32, %c0_i32_0 : i32, i32
  }
  func.func @transform_3(%arg0: i32) -> (i32, i32) {
    %c0_i32 = arith.constant 0 : i32
    %c0_i32_0 = arith.constant 0 : i32
    %c0_i32_1 = arith.constant 0 : i32
    return %c0_i32, %c0_i32_0 : i32, i32
  }
  func.func @transform_4(%arg0: i32) -> (i32, i32) {
    %c0_i32 = arith.constant 0 : i32
    %c0_i32_0 = arith.constant 0 : i32
    %c0_i32_1 = arith.constant 0 : i32
    return %c0_i32, %c0_i32_0 : i32, i32
  }
  func.func @transform_5(%arg0: i32) -> (i32, i32) {
    %c0_i32 = arith.constant 0 : i32
    %c0_i32_0 = arith.constant 0 : i32
    %c0_i32_1 = arith.constant 0 : i32
    return %c0_i32, %c0_i32_0 : i32, i32
  }
  func.func @transform_6(%arg0: i32) -> (i32, i32) {
    %c0_i32 = arith.constant 0 : i32
    %c0_i32_0 = arith.constant 0 : i32
    %c0_i32_1 = arith.constant 0 : i32
    return %c0_i32, %c0_i32_0 : i32, i32
  }
  func.func @transform_7(%arg0: i32) -> (i32, i32) {
    %c0_i32 = arith.constant 0 : i32
    %c0_i32_0 = arith.constant 0 : i32
    %c0_i32_1 = arith.constant 0 : i32
    return %c0_i32, %c0_i32_0 : i32, i32
  }
  func.func @transform_8(%arg0: i32) -> (i32, i32) {
    %c0_i32 = arith.constant 0 : i32
    %c0_i32_0 = arith.constant 0 : i32
    %c0_i32_1 = arith.constant 0 : i32
    return %c0_i32, %c0_i32_0 : i32, i32
  }
  func.func @transform_9(%arg0: i32) -> (i32, i32) {
    %c0_i32 = arith.constant 0 : i32
    %c0_i32_0 = arith.constant 0 : i32
    %c0_i32_1 = arith.constant 0 : i32
    return %c0_i32, %c0_i32_0 : i32, i32
  }
  func.func @transform_10(%arg0: i32) -> (i32, i32) {
    %c0_i32 = arith.constant 0 : i32
    %c0_i32_0 = arith.constant 0 : i32
    %c0_i32_1 = arith.constant 0 : i32
    return %c0_i32, %c0_i32_0 : i32, i32
  }
  func.func @transform_11(%arg0: i32) -> (i32, i32) {
    %c0_i32 = arith.constant 0 : i32
    %c0_i32_0 = arith.constant 0 : i32
    return %arg0, %c0_i32 : i32, i32
  }
}

module attributes {stable_mosaic.version = 11 : i64} {
  func.func @_mlp_model_kernel(%arg0: i32, %arg1: memref<8x32xf32, #tpu.memory_space<vmem>>, %arg2: memref<1x32xf32, #tpu.memory_space<vmem>>, %arg3: memref<1x32xf32, #tpu.memory_space<vmem>>, %arg4: memref<1x128xf32, #tpu.memory_space<vmem>>, %arg5: memref<1x128xf32, #tpu.memory_space<vmem>>, %arg6: memref<32x128xf32, #tpu.memory_space<vmem>>, %arg7: memref<1x128xf32, #tpu.memory_space<vmem>>, %arg8: memref<128x128xf32, #tpu.memory_space<vmem>>, %arg9: memref<1x128xf32, #tpu.memory_space<vmem>>, %arg10: memref<128x128xf32, #tpu.memory_space<vmem>>, %arg11: memref<1x128xf32, #tpu.memory_space<vmem>>, %arg12: memref<8x128xf32, #tpu.memory_space<vmem>>) attributes {dimension_semantics = [#tpu.dimension_semantics<parallel>], iteration_bounds = array<i64: 1>, scalar_prefetch = 0 : i64, scratch_operands = 0 : i64, tpu.core_type = #tpu.core_type<tc>, window_params = [{transform_indices = @transform_0, window_bounds = array<i64: 8, 32>}, {pipeline_mode = #tpu.pipeline_mode<synchronous>, transform_indices = @transform_1, window_bounds = array<i64: 1, 32>}, {pipeline_mode = #tpu.pipeline_mode<synchronous>, transform_indices = @transform_2, window_bounds = array<i64: 1, 32>}, {pipeline_mode = #tpu.pipeline_mode<synchronous>, transform_indices = @transform_3, window_bounds = array<i64: 1, 128>}, {pipeline_mode = #tpu.pipeline_mode<synchronous>, transform_indices = @transform_4, window_bounds = array<i64: 1, 128>}, {pipeline_mode = #tpu.pipeline_mode<synchronous>, transform_indices = @transform_5, window_bounds = array<i64: 32, 128>}, {pipeline_mode = #tpu.pipeline_mode<synchronous>, transform_indices = @transform_6, window_bounds = array<i64: 1, 128>}, {pipeline_mode = #tpu.pipeline_mode<synchronous>, transform_indices = @transform_7, window_bounds = array<i64: 128, 128>}, {pipeline_mode = #tpu.pipeline_mode<synchronous>, transform_indices = @transform_8, window_bounds = array<i64: 1, 128>}, {pipeline_mode = #tpu.pipeline_mode<synchronous>, transform_indices = @transform_9, window_bounds = array<i64: 128, 128>}, {pipeline_mode = #tpu.pipeline_mode<synchronous>, transform_indices = @transform_10, window_bounds = array<i64: 1, 128>}, {transform_indices = @transform_11, window_bounds = array<i64: 8, 128>}]} {
    %c0 = arith.constant 0 : index
    %c0_0 = arith.constant 0 : index
    %0 = vector.load %arg1[%c0, %c0_0] : memref<8x32xf32, #tpu.memory_space<vmem>>, vector<8x32xf32>
    %cst = arith.constant dense<0.000000e+00> : vector<8xf32>
    %1 = vector.multi_reduction <add>, %0, %cst [1] : vector<8x32xf32> to vector<8xf32>
    %2 = vector.shape_cast %1 : vector<8xf32> to vector<8x1xf32>
    %cst_1 = arith.constant 3.200000e+01 : f32
    %3 = vector.broadcast %cst_1 : f32 to vector<8x1xf32>
    %4 = arith.divf %2, %3 : vector<8x1xf32>
    %5 = vector.broadcast %4 : vector<8x1xf32> to vector<8x32xf32>
    %6 = arith.subf %0, %5 : vector<8x32xf32>
    %7 = arith.mulf %6, %6 : vector<8x32xf32>
    %cst_2 = arith.constant dense<0.000000e+00> : vector<8xf32>
    %8 = vector.multi_reduction <add>, %7, %cst_2 [1] : vector<8x32xf32> to vector<8xf32>
    %9 = vector.shape_cast %8 : vector<8xf32> to vector<8x1xf32>
    %cst_3 = arith.constant 3.200000e+01 : f32
    %10 = vector.broadcast %cst_3 : f32 to vector<8x1xf32>
    %11 = arith.divf %9, %10 : vector<8x1xf32>
    %cst_4 = arith.constant 9.99999974E-6 : f32
    %12 = vector.broadcast %cst_4 : f32 to vector<8x1xf32>
    %13 = arith.addf %11, %12 : vector<8x1xf32>
    %14 = math.rsqrt %13 : vector<8x1xf32>
    %15 = vector.broadcast %14 : vector<8x1xf32> to vector<8x32xf32>
    %16 = arith.mulf %6, %15 : vector<8x32xf32>
    %c0_5 = arith.constant 0 : index
    %c0_6 = arith.constant 0 : index
    %17 = vector.load %arg2[%c0_5, %c0_6] : memref<1x32xf32, #tpu.memory_space<vmem>>, vector<1x32xf32>
    %18 = vector.broadcast %17 : vector<1x32xf32> to vector<8x32xf32>
    %19 = arith.mulf %16, %18 : vector<8x32xf32>
    %c0_7 = arith.constant 0 : index
    %c0_8 = arith.constant 0 : index
    %20 = vector.load %arg3[%c0_7, %c0_8] : memref<1x32xf32, #tpu.memory_space<vmem>>, vector<1x32xf32>
    %21 = vector.broadcast %20 : vector<1x32xf32> to vector<8x32xf32>
    %22 = arith.addf %19, %21 : vector<8x32xf32>
    %c0_9 = arith.constant 0 : index
    %c0_10 = arith.constant 0 : index
    %23 = vector.load %arg6[%c0_9, %c0_10] : memref<32x128xf32, #tpu.memory_space<vmem>>, vector<32x128xf32>
    %c0_11 = arith.constant 0 : index
    %c0_12 = arith.constant 0 : index
    %24 = vector.load %arg7[%c0_11, %c0_12] : memref<1x128xf32, #tpu.memory_space<vmem>>, vector<1x128xf32>
    %cst_13 = arith.constant dense<0.000000e+00> : vector<8x128xf32>
    %25 = tpu.matmul %22, %23, %cst_13 {dimension_numbers = #tpu.dot_dimension_numbers<[1], [0], [0], [1], [0, 0, 1, 1], [], []>} : vector<8x32xf32>, vector<32x128xf32>, vector<8x128xf32> -> vector<8x128xf32>
    %26 = vector.broadcast %24 : vector<1x128xf32> to vector<8x128xf32>
    %27 = arith.addf %25, %26 : vector<8x128xf32>
    %cst_14 = arith.constant 0.000000e+00 : f32
    %28 = vector.broadcast %cst_14 : f32 to vector<8x128xf32>
    %29 = arith.cmpf ogt, %27, %28 : vector<8x128xf32>
    %cst_15 = arith.constant 0.00999999977 : f32
    %30 = vector.broadcast %cst_15 : f32 to vector<8x128xf32>
    %31 = arith.mulf %30, %27 : vector<8x128xf32>
    %32 = arith.select %29, %27, %31 : vector<8x128xi1>, vector<8x128xf32>
    %c0_16 = arith.constant 0 : index
    %c0_17 = arith.constant 0 : index
    %33 = vector.load %arg8[%c0_16, %c0_17] : memref<128x128xf32, #tpu.memory_space<vmem>>, vector<128x128xf32>
    %c0_18 = arith.constant 0 : index
    %c0_19 = arith.constant 0 : index
    %34 = vector.load %arg9[%c0_18, %c0_19] : memref<1x128xf32, #tpu.memory_space<vmem>>, vector<1x128xf32>
    %cst_20 = arith.constant dense<0.000000e+00> : vector<8x128xf32>
    %35 = tpu.matmul %32, %33, %cst_20 {dimension_numbers = #tpu.dot_dimension_numbers<[1], [0], [0], [1], [0, 0, 1, 1], [], []>} : vector<8x128xf32>, vector<128x128xf32>, vector<8x128xf32> -> vector<8x128xf32>
    %36 = vector.broadcast %34 : vector<1x128xf32> to vector<8x128xf32>
    %37 = arith.addf %35, %36 : vector<8x128xf32>
    %cst_21 = arith.constant 0.000000e+00 : f32
    %38 = vector.broadcast %cst_21 : f32 to vector<8x128xf32>
    %39 = arith.cmpf ogt, %37, %38 : vector<8x128xf32>
    %cst_22 = arith.constant 0.00999999977 : f32
    %40 = vector.broadcast %cst_22 : f32 to vector<8x128xf32>
    %41 = arith.mulf %40, %37 : vector<8x128xf32>
    %42 = arith.select %39, %37, %41 : vector<8x128xi1>, vector<8x128xf32>
    %c0_23 = arith.constant 0 : index
    %c0_24 = arith.constant 0 : index
    %43 = vector.load %arg10[%c0_23, %c0_24] : memref<128x128xf32, #tpu.memory_space<vmem>>, vector<128x128xf32>
    %c0_25 = arith.constant 0 : index
    %c0_26 = arith.constant 0 : index
    %44 = vector.load %arg11[%c0_25, %c0_26] : memref<1x128xf32, #tpu.memory_space<vmem>>, vector<1x128xf32>
    %cst_27 = arith.constant dense<0.000000e+00> : vector<8x128xf32>
    %45 = tpu.matmul %42, %43, %cst_27 {dimension_numbers = #tpu.dot_dimension_numbers<[1], [0], [0], [1], [0, 0, 1, 1], [], []>} : vector<8x128xf32>, vector<128x128xf32>, vector<8x128xf32> -> vector<8x128xf32>
    %46 = vector.broadcast %44 : vector<1x128xf32> to vector<8x128xf32>
    %47 = arith.addf %45, %46 : vector<8x128xf32>
    %c0_28 = arith.constant 0 : index
    %c0_29 = arith.constant 0 : index
    %48 = vector.load %arg4[%c0_28, %c0_29] : memref<1x128xf32, #tpu.memory_space<vmem>>, vector<1x128xf32>
    %49 = vector.broadcast %48 : vector<1x128xf32> to vector<8x128xf32>
    %50 = arith.mulf %47, %49 : vector<8x128xf32>
    %c0_30 = arith.constant 0 : index
    %c0_31 = arith.constant 0 : index
    %51 = vector.load %arg5[%c0_30, %c0_31] : memref<1x128xf32, #tpu.memory_space<vmem>>, vector<1x128xf32>
    %52 = vector.broadcast %51 : vector<1x128xf32> to vector<8x128xf32>
    %53 = arith.addf %50, %52 : vector<8x128xf32>
    %c0_32 = arith.constant 0 : index
    %c0_33 = arith.constant 0 : index
    %54 = vector.load %arg12[%c0_32, %c0_33] : memref<8x128xf32, #tpu.memory_space<vmem>>, vector<8x128xf32>
    tpu.vector_store %arg12[%c0_32, %c0_33], %53 {strides = array<i32>} : memref<8x128xf32, #tpu.memory_space<vmem>>, vector<8x128xf32>,
    return
  }
  func.func @transform_0(%arg0: i32) -> (i32, i32) {
    %c0_i32 = arith.constant 0 : i32
    %c0_i32_0 = arith.constant 0 : i32
    return %arg0, %c0_i32 : i32, i32
  }
  func.func @transform_1(%arg0: i32) -> (i32, i32) {
    %c0_i32 = arith.constant 0 : i32
    %c0_i32_0 = arith.constant 0 : i32
    %c0_i32_1 = arith.constant 0 : i32
    return %c0_i32, %c0_i32_0 : i32, i32
  }
  func.func @transform_2(%arg0: i32) -> (i32, i32) {
    %c0_i32 = arith.constant 0 : i32
    %c0_i32_0 = arith.constant 0 : i32
    %c0_i32_1 = arith.constant 0 : i32
    return %c0_i32, %c0_i32_0 : i32, i32
  }
  func.func @transform_3(%arg0: i32) -> (i32, i32) {
    %c0_i32 = arith.constant 0 : i32
    %c0_i32_0 = arith.constant 0 : i32
    %c0_i32_1 = arith.constant 0 : i32
    return %c0_i32, %c0_i32_0 : i32, i32
  }
  func.func @transform_4(%arg0: i32) -> (i32, i32) {
    %c0_i32 = arith.constant 0 : i32
    %c0_i32_0 = arith.constant 0 : i32
    %c0_i32_1 = arith.constant 0 : i32
    return %c0_i32, %c0_i32_0 : i32, i32
  }
  func.func @transform_5(%arg0: i32) -> (i32, i32) {
    %c0_i32 = arith.constant 0 : i32
    %c0_i32_0 = arith.constant 0 : i32
    %c0_i32_1 = arith.constant 0 : i32
    return %c0_i32, %c0_i32_0 : i32, i32
  }
  func.func @transform_6(%arg0: i32) -> (i32, i32) {
    %c0_i32 = arith.constant 0 : i32
    %c0_i32_0 = arith.constant 0 : i32
    %c0_i32_1 = arith.constant 0 : i32
    return %c0_i32, %c0_i32_0 : i32, i32
  }
  func.func @transform_7(%arg0: i32) -> (i32, i32) {
    %c0_i32 = arith.constant 0 : i32
    %c0_i32_0 = arith.constant 0 : i32
    %c0_i32_1 = arith.constant 0 : i32
    return %c0_i32, %c0_i32_0 : i32, i32
  }
  func.func @transform_8(%arg0: i32) -> (i32, i32) {
    %c0_i32 = arith.constant 0 : i32
    %c0_i32_0 = arith.constant 0 : i32
    %c0_i32_1 = arith.constant 0 : i32
    return %c0_i32, %c0_i32_0 : i32, i32
  }
  func.func @transform_9(%arg0: i32) -> (i32, i32) {
    %c0_i32 = arith.constant 0 : i32
    %c0_i32_0 = arith.constant 0 : i32
    %c0_i32_1 = arith.constant 0 : i32
    return %c0_i32, %c0_i32_0 : i32, i32
  }
  func.func @transform_10(%arg0: i32) -> (i32, i32) {
    %c0_i32 = arith.constant 0 : i32
    %c0_i32_0 = arith.constant 0 : i32
    %c0_i32_1 = arith.constant 0 : i32
    return %c0_i32, %c0_i32_0 : i32, i32
  }
  func.func @transform_11(%arg0: i32) -> (i32, i32) {
    %c0_i32 = arith.constant 0 : i32
    %c0_i32_0 = arith.constant 0 : i32
    return %arg0, %c0_i32 : i32, i32
  }
}

</mosaic_0001>

<bundles_post_ra>
// kernel: tpu_custom_call.1
= control target key start
LH: loop header
LB: loop body
LE: loop exit
PB: predicated region body
PF: predicated region fallthrough
CT: control target
= control target key end

     0   :  { %16 = vsyncpa [#allocation3], 0  ;;  %s930_s0 = inlined_call_operand.hbm [shape: f32[8,32], index: 0, kind: input, shape index: {}]   ;;  %s931_s1 = inlined_call_operand.vmem [shape: f32[1,32], index: 1, kind: input, shape index: {}]   ;;  %s932_s2 = inlined_call_operand.vmem [shape: f32[1,32], index: 2, kind: input, shape index: {}]   ;;  %s933_s3 = inlined_call_operand.vmem [shape: f32[1,128], index: 3, kind: input, shape index: {}]   ;;  %s934_s4 = inlined_call_operand.vmem [shape: f32[1,128], index: 4, kind: input, shape index: {}]   ;;  %s935_s5 = inlined_call_operand.hbm [shape: f32[32,128], index: 5, kind: input, shape index: {}]   ;;  %s936_s6 = inlined_call_operand.vmem [shape: f32[1,128], index: 6, kind: input, shape index: {}]   ;;  %s937_s7 = inlined_call_operand.hbm [shape: f32[128,128], index: 7, kind: input, shape index: {}]   ;;  %s938_s8 = inlined_call_operand.vmem [shape: f32[1,128], index: 8, kind: input, shape index: {}]   ;;  %s939_s9 = inlined_call_operand.hbm [shape: f32[128,128], index: 9, kind: input, shape index: {}]   ;;  %s940_s10 = inlined_call_operand.vmem [shape: f32[1,128], index: 10, kind: input, shape index: {}]   ;;  %s941_s11 = inlined_call_operand.hbm [shape: f32[8,128], index: 11, kind: output, shape index: {}]  }
   0x1   :  { %17 = vsyncpa [#allocation6], 0 }
   0x2   :  { %18 = vsyncpa [#allocation9], 0 }
   0x3   :  { %19 = vsyncpa [#allocation4], 0  ;;  %s746_s17 = smov [#allocation5]   ;;  %s628_s21 = scalar_lea.hbm %s935_s5, 512 }
   0x4   :  { %s43_s18 = sshll.u32 %s746_s17, 4  ;;  %p629_p0 = scmp.ne.s32.totalorder %s935_s5, %s628_s21  ;;  %s44_s18 = int_to_ptr.vmem [resolvable:$true] %s43_s18 }
   0x5   :  { %p632_p1 = scmp.lt.u32.totalorder %s628_s21, %s935_s5 }
   0x7   :  { %p634_p2 = pnand %p632_p1, %p629_p0 }
   0x9   :  { %637 = shalt.err (!%p634_p2)
}
   0xa   :  { %s638_s26 = scalar_lea.vmem %s44_s18, 512  ;;  %p643_p4 = scmp.lt.s32.totalorder %s44_s18, %s44_s18 }
   0xb   :  { %p639_p3 = scmp.ne.s32.totalorder %s44_s18, %s638_s26  ;;  %p644_p5 = scmp.lt.s32.totalorder %s638_s26, %s638_s26 }
   0xd   :  { %p645_p6 = por %p644_p5, %p643_p4 }
   0xf   :  { %p646_p7 = pnand %p645_p6, %p639_p3 }
  0x11   :  { %649 = shalt.err (!%p646_p7)
}
  0x12   :  { %s747_s27 = smov 128   ;;  %s748_s28 = smov 8  }
  0x13   :  { %49 = dma.hbm_to_vmem [thread:$0]  %s935_s5, 512, %s44_s18, [#allocation6], %s747_s27, %s747_s27, %s748_s28  }
  0x14   :  { %s749_s12 = smov [#allocation2]   ;;  %s750_s14 = smov [#allocation7]  }
  0x15   :  { %s26_s13 = sshll.u32 %s749_s12, 4  ;;  %s57_s15 = sshll.u32 %s750_s14, 4  ;;  %s27_s13 = int_to_ptr.vmem [resolvable:$true] %s26_s13  ;;  %s58_s15 = int_to_ptr.vmem [resolvable:$true] %s57_s15 }
  0x16   :  { %s650_s19 = scalar_lea.hbm %s930_s0, 128 }
  0x17   :  { %p651_p8 = scmp.ne.s32.totalorder %s930_s0, %s650_s19  ;;  %p654_p9 = scmp.lt.u32.totalorder %s650_s19, %s930_s0 }
  0x19   :  { %p656_p10 = pnand %p654_p9, %p651_p8 }
  0x1b   :  { %659 = shalt.err (!%p656_p10)
}
  0x1c   :  { %s660_s5 = scalar_lea.vmem %s27_s13, 128  ;;  %p665_p12 = scmp.lt.s32.totalorder %s27_s13, %s27_s13 }
  0x1d   :  { %p661_p11 = scmp.ne.s32.totalorder %s27_s13, %s660_s5  ;;  %p666_p13 = scmp.lt.s32.totalorder %s660_s5, %s660_s5 }
  0x1f   :  { %p667_p0 = por %p666_p13, %p665_p12 }
  0x21   :  { %p668_p1 = pnand %p667_p0, %p661_p11 }
  0x23   :  { %671 = shalt.err (!%p668_p1)
}
  0x24   :  { %29 = dma.hbm_to_vmem [thread:$0]  %s930_s0, 128, %s27_s13, [#allocation3]  }
  0x25   :  { %s672_s29 = scalar_lea.hbm %s937_s7, 2048 }
  0x26   :  { %p673_p2 = scmp.ne.s32.totalorder %s937_s7, %s672_s29  ;;  %p676_p3 = scmp.lt.u32.totalorder %s672_s29, %s937_s7 }
  0x28   :  { %p678_p4 = pnand %p676_p3, %p673_p2 }
  0x2a   :  { %681 = shalt.err (!%p678_p4)
}
  0x2b   :  { %s682_s17 = scalar_lea.vmem %s58_s15, 2048  ;;  %p687_p6 = scmp.lt.s32.totalorder %s58_s15, %s58_s15 }
  0x2c   :  { %p683_p5 = scmp.ne.s32.totalorder %s58_s15, %s682_s17  ;;  %p688_p7 = scmp.lt.s32.totalorder %s682_s17, %s682_s17 }
  0x2e   :  { %p689_p8 = por %p688_p7, %p687_p6 }
  0x30   :  { %p690_p9 = pnand %p689_p8, %p683_p5 }
  0x32   :  { %693 = shalt.err (!%p690_p9)
}
  0x33   :  { %63 = dma.hbm_to_vmem [thread:$0]  %s937_s7, 2048, %s58_s15, [#allocation6], %s747_s27, %s747_s27, %s748_s28  }
  0x34   :  { %s751_s19 = smov [#allocation8]   ;;  %s694_s23 = scalar_lea.hbm %s939_s9, 2048 }
  0x35   :  { %s71_s20 = sshll.u32 %s751_s19, 4  ;;  %p695_p10 = scmp.ne.s32.totalorder %s939_s9, %s694_s23  ;;  %s72_s20 = int_to_ptr.vmem [resolvable:$true] %s71_s20 }
  0x36   :  { %p698_p11 = scmp.lt.u32.totalorder %s694_s23, %s939_s9 }
  0x38   :  { %p700_p12 = pnand %p698_p11, %p695_p10 }
  0x3a   :  { %703 = shalt.err (!%p700_p12)
}
  0x3b   :  { %s704_s26 = scalar_lea.vmem %s72_s20, 2048  ;;  %p709_p0 = scmp.lt.s32.totalorder %s72_s20, %s72_s20 }
  0x3c   :  { %p705_p13 = scmp.ne.s32.totalorder %s72_s20, %s704_s26  ;;  %p710_p1 = scmp.lt.s32.totalorder %s704_s26, %s704_s26 }
  0x3e   :  { %p711_p2 = por %p710_p1, %p709_p0 }
  0x40   :  { %p712_p3 = pnand %p711_p2, %p705_p13 }
  0x42   :  { %715 = shalt.err (!%p712_p3)
}
  0x43   :  { %77 = dma.hbm_to_vmem [thread:$0]  %s939_s9, 2048, %s72_s20, [#allocation9], %s747_s27, %s747_s27, %s748_s28  }
  0x44   :  { %738 = dma.done.wait [#allocation3], 128  }
  0x45   :  { %739 = vsyncadd [#allocation3], 4294967168 }
  0x46   :  { %740 = dma.done.wait [#allocation6], 2560  }
  0x47   :  { %741 = vsyncadd [#allocation6], 4294964736 }
  0x48   :  { %742 = dma.done.wait [#allocation9], 2048  }
  0x49   :  { %743 = vsyncadd [#allocation9], 4294965248  ;;  %vm93_vm0 = vcmask 261120   ;;  %v92_v0 = vld [vmem:[#allocation2] sm:$0xff]  ;;  %v124_v7 = vld [vmem:[#allocation5] sm:$0xff]  ;;  %v752_v10 = vmov 0.0|0.0  }
  0x4a   :  { %v94_v1 = vsel %vm93_vm0, %v92_v0, 0.0  ;;  %v125_v8 = vld [vmem:[#allocation5 + $0x8] sm:$0xff]  ;;  %v126_v9 = vld [vmem:[#allocation5 + $0x10] sm:$0xff]  ;;  %562 = vmatprep.subr.bf16.mxu0 %v752_v10  ;;  %v127_v12 = vld [vmem:[#allocation5 + $0x18] sm:$0xff]  ;;  %vm753_vm1 = vmmov 0   ;;  %v754_v13 = vmov 0.0   ;;  %568 = vmatprep.subr.bf16.mxu1 %v752_v10 }
  0x4b   :  { %95 = vadd.xlane.f32.xlu0 %v94_v1  ;;  %v563_v11 = vpack.c.bf16 %v125_v8, %v124_v7  ;;  %489 = vmatprep.mubr.msk.f32.mxu0 %vm753_vm1, %v754_v13  ;;  %v566_v14 = vpack.c.bf16 %v127_v12, %v126_v9  ;;  %v211_v15 = vld [vmem:[#allocation7] sm:$0xff]  ;;  %v212_v16 = vld [vmem:[#allocation7 + $0x8] sm:$0xff]  ;;  %v213_v17 = vld [vmem:[#allocation7 + $0x10] sm:$0xff]  ;;  %s755_s13 = smov [#allocation10]  }
  0x4c   :  { %524 = vmatprep.mubr.msk.f32.mxu1 %vm753_vm1, %v754_v13  ;;  %v569_v18 = vpack.c.bf16 %v212_v16, %v211_v15  ;;  %v214_v19 = vld [vmem:[#allocation7 + $0x18] sm:$0xff]  ;;  %v215_v21 = vld [vmem:[#allocation7 + $0x20] sm:$0xff]  ;;  %v216_v22 = vld [vmem:[#allocation7 + $0x28] sm:$0xff]  ;;  %s423_s19 = sshll.u32 %s755_s13, 4  ;;  %s424_s19 = int_to_ptr.vmem [resolvable:$true] %s423_s19 }
  0x4d   :  { %564 = vmatpush3.bf16.msra.mxu0 %v563_v11  ;;  %v572_v20 = vpack.c.bf16 %v214_v19, %v213_v17  ;;  %v575_v23 = vpack.c.bf16 %v216_v22, %v215_v21  ;;  %v217_v24 = vld [vmem:[#allocation7 + $0x30] sm:$0xff]  ;;  %v218_v25 = vld [vmem:[#allocation7 + $0x38] sm:$0xff]  ;;  %v219_v27 = vld [vmem:[#allocation7 + $0x40] sm:$0xff]  ;;  %s716_s20 = scalar_lea.vmem %s424_s19, 128  ;;  %p721_p5 = scmp.lt.s32.totalorder %s424_s19, %s424_s19 }
  0x4e   :  { %565 = vmatprep.subr.bf16.mxu0 %v752_v10  ;;  %570 = vmatpush3.bf16.msra.mxu1 %v569_v18  ;;  %v578_v26 = vpack.c.bf16 %v218_v25, %v217_v24  ;;  %v220_v28 = vld [vmem:[#allocation7 + $0x48] sm:$0xff]  ;;  %v221_v30 = vld [vmem:[#allocation7 + $0x50] sm:$0xff]  ;;  %v222_v31 = vld [vmem:[#allocation7 + $0x58] sm:$0xff]  ;;  %p717_p4 = scmp.ne.s32.totalorder %s424_s19, %s716_s20  ;;  %p722_p6 = scmp.lt.s32.totalorder %s716_s20, %s716_s20 }
  0x4f   :  { %571 = vmatprep.subr.bf16.mxu1 %v752_v10  ;;  %v581_v29 = vpack.c.bf16 %v220_v28, %v219_v27  ;;  %v584_v32 = vpack.c.bf16 %v222_v31, %v221_v30  ;;  %v223_v33 = vld [vmem:[#allocation7 + $0x60] sm:$0xff]  ;;  %v224_v34 = vld [vmem:[#allocation7 + $0x68] sm:$0xff]  ;;  %v434_v40 = vld [vmem:[%s931_s1] ss:$0 sm:$0xff] }
  0x50   :  { %v587_v35 = vpack.c.bf16 %v224_v34, %v223_v33  ;;  %v435_v42 = vld [vmem:[%s932_s2] ss:$0 sm:$0xff]  ;;  %v225_v45 = vld [vmem:[#allocation7 + $0x70] sm:$0xff]  ;;  %v307_v48 = vld [vmem:[#allocation8] sm:$0xff]  ;;  %p723_p7 = por %p722_p6, %p721_p5 }
  0x51   :  { %567 = vmatpush3.bf16.msra.mxu0 %v566_v14  ;;  %v226_v46 = vld [vmem:[#allocation7 + $0x78] sm:$0xff]  ;;  %v308_v49 = vld [vmem:[#allocation8 + $0x8] sm:$0xff]  ;;  %v309_v50 = vld [vmem:[#allocation8 + $0x10] sm:$0xff] }
  0x52   :  { %592 = vmatprep.subr.bf16.mxu0 %v752_v10  ;;  %573 = vmatpush3.bf16.msra.mxu1 %v572_v20  ;;  %v590_v47 = vpack.c.bf16 %v226_v46, %v225_v45  ;;  %v593_v51 = vpack.c.bf16 %v308_v49, %v307_v48  ;;  %v310_v52 = vld [vmem:[#allocation8 + $0x18] sm:$0xff]  ;;  %v311_v54 = vld [vmem:[#allocation8 + $0x20] sm:$0xff]  ;;  %v312_v55 = vld [vmem:[#allocation8 + $0x28] sm:$0xff]  ;;  %p724_p8 = pnand %p723_p7, %p717_p4 }
  0x53   :  { %574 = vmatprep.subr.bf16.mxu1 %v752_v10  ;;  %v596_v53 = vpack.c.bf16 %v310_v52, %v309_v50  ;;  %v599_v56 = vpack.c.bf16 %v312_v55, %v311_v54  ;;  %v313_v57 = vld [vmem:[#allocation8 + $0x30] sm:$0xff]  ;;  %v314_v58 = vld [vmem:[#allocation8 + $0x38] sm:$0xff]  ;;  %v315_v60 = vld [vmem:[#allocation8 + $0x40] sm:$0xff] }
  0x54   :  { %v602_v59 = vpack.c.bf16 %v314_v58, %v313_v57  ;;  %v316_v61 = vld [vmem:[#allocation8 + $0x48] sm:$0xff]  ;;  %v317_v63 = vld [vmem:[#allocation8 + $0x50] sm:$0xff]  ;;  %v438_v15 = vld [vmem:[%s938_s8] ss:$0 sm:$0xff] }
  0x55   :  { %v605_v62 = vpack.c.bf16 %v316_v61, %v315_v60  ;;  %v321_v12 = vld [vmem:[#allocation8 + $0x70] sm:$0xff]  ;;  %v439_v20 = vld [vmem:[%s940_s10] ss:$0 sm:$0xff] }
  0x56   :  { %576 = vmatpush3.bf16.msra.mxu1 %v575_v23  ;;  %v440_v22 = vld [vmem:[%s933_s3] ss:$0 sm:$0xff] }
  0x57   :  { %577 = vmatprep.subr.bf16.mxu1 %v752_v10  ;;  %v441_v25 = vld [vmem:[%s934_s4] ss:$0 sm:$0xff] }
  0x5a   :  { %579 = vmatpush3.bf16.msra.mxu1 %v578_v26 }
  0x5b   :  { %580 = vmatprep.subr.bf16.mxu1 %v752_v10 }
  0x5e   :  { %582 = vmatpush3.bf16.msra.mxu1 %v581_v29 }
  0x5f   :  { %583 = vmatprep.subr.bf16.mxu1 %v752_v10 }
  0x62   :  { %585 = vmatpush3.bf16.msra.mxu1 %v584_v32 }
  0x63   :  { %586 = vmatprep.subr.bf16.mxu1 %v752_v10 }
  0x66   :  { %588 = vmatpush3.bf16.msra.mxu1 %v587_v35 }
  0x67   :  { %589 = vmatprep.subr.bf16.mxu1 %v752_v10 }
  0x6a   :  { %591 = vmatpush3.bf16.msra.mxu1 %v590_v47 }
  0xd8   :  { %v96_v2 = vpop.xlane.xlu0 %95 }
  0xd9   :  { %v98_v3 = vmul.f32 0.03125, %v96_v2  ;;  %v319_v2 = vld [vmem:[#allocation8 + $0x60] sm:$0xff] }
  0xdb   :  { %v99_v4 = vsub.f32 %v92_v0, %v98_v3  ;;  %v318_v0 = vld [vmem:[#allocation8 + $0x58] sm:$0xff]  ;;  %v320_v3 = vld [vmem:[#allocation8 + $0x68] sm:$0xff] }
  0xdc   :  { %v608_v1 = vpack.c.bf16 %v318_v0, %v317_v63 }
  0xdd   :  { %v100_v5 = vmul.f32 %v99_v4, %v99_v4 }
  0xdf   :  { %v101_v6 = vsel %vm93_vm0, %v100_v5, 0.0  ;;  %v436_v5 = vld [vmem:[%s936_s6] ss:$0 sm:$0xff] }
  0xe0   :  { %102 = vadd.xlane.f32.xlu0 %v101_v6 }
 0x16d   :  { %v103_v36 = vpop.xlane.xlu0 %102 }
 0x16e   :  { %v104_v37 = vmul.f32 0.03125, %v103_v36 }
 0x170   :  { %v105_v38 = vadd.f32 1e-05, %v104_v37 }
 0x172   :  { %626 = vrsqrt.f32 %v105_v38 }
 0x17c   :  { %v627_v39 = vpop.eup %626 }
 0x17d   :  { %v107_v41 = vmul.f32 %v627_v39, %v99_v4  ;;  %v611_v4 = vpack.c.bf16 %v320_v3, %v319_v2 }
 0x17f   :  { %v115_v43 = vmul.f32 %v434_v40, %v107_v41 }
 0x181   :  { %v123_v44 = vadd.f32 %v435_v42, %v115_v43 }
 0x183   :  { %490 = vmatmul.mubr.msk.f32.vlgmr.msra.gmra.mrb[0].mxu0 %vm93_vm0, %v123_v44 }
 0x184   :  { %559 = vmatprep.mubr.msk.f32.mxu0 %vm753_vm1, %v754_v13  ;;  %594 = vmatpush3.bf16.msra.mxu0 %v593_v51  ;;  %v322_v13 = vld [vmem:[#allocation8 + $0x78] sm:$0xff] }
 0x185   :  { %595 = vmatprep.subr.bf16.mxu0 %v752_v10  ;;  %v614_v14 = vpack.c.bf16 %v322_v13, %v321_v12 }
 0x188   :  { %597 = vmatpush3.bf16.msra.mxu0 %v596_v53 }
 0x189   :  { %598 = vmatprep.subr.bf16.mxu0 %v752_v10 }
 0x18c   :  { %600 = vmatpush3.bf16.msra.mxu0 %v599_v56 }
 0x18d   :  { %601 = vmatprep.subr.bf16.mxu0 %v752_v10 }
 0x190   :  { %603 = vmatpush3.bf16.msra.mxu0 %v602_v59 }
 0x191   :  { %604 = vmatprep.subr.bf16.mxu0 %v752_v10 }
 0x194   :  { %606 = vmatpush3.bf16.msra.mxu0 %v605_v62 }
 0x195   :  { %607 = vmatprep.subr.bf16.mxu0 %v752_v10 }
 0x198   :  { %609 = vmatpush3.bf16.msra.mxu0 %v608_v1 }
 0x199   :  { %610 = vmatprep.subr.bf16.mxu0 %v752_v10 }
 0x19c   :  { %612 = vmatpush3.bf16.msra.mxu0 %v611_v4 }
 0x19d   :  { %613 = vmatprep.subr.bf16.mxu0 %v752_v10 }
 0x1a0   :  { %615 = vmatpush3.bf16.msra.mxu0 %v614_v14 }
 0x256   :  { %v204_v6 = vpop.f32.mrb[0].mxu0 }
 0x257   :  { %v205_v7 = vadd.f32 %v436_v5, %v204_v6  ;;  %v491_v8 = vpop.f32.mrb[1].mxu0 }
 0x259   :  { %v209_v9 = vmul.f32 0.01, %v205_v7  ;;  %vm208_vm2 = vcmp.gt.f32.partialorder %v205_v7, 0.0 }
 0x25b   :  { %v210_v11 = vsel %vm208_vm2, %v205_v7, %v209_v9 }
 0x25c   :  { %525 = vmatmul.mubr.f32.vlgmr.msra.gmra.mrb[0].mxu1 %v210_v11 }
 0x32f   :  { %v300_v10 = vpop.f32.mrb[0].mxu1 }
 0x330   :  { %v301_v16 = vadd.f32 %v438_v15, %v300_v10  ;;  %v526_v17 = vpop.f32.mrb[1].mxu1 }
 0x332   :  { %vm304_vm3 = vcmp.gt.f32.partialorder %v301_v16, 0.0  ;;  %v305_v18 = vmul.f32 0.01, %v301_v16 }
 0x334   :  { %v306_v19 = vsel %vm304_vm3, %v301_v16, %v305_v18 }
 0x335   :  { %560 = vmatmul.mubr.f32.vlgmr.msra.gmra.mrb[2].mxu0 %v306_v19 }
 0x408   :  { %v396_v21 = vpop.f32.mrb[2].mxu0 }
 0x409   :  { %v397_v23 = vadd.f32 %v439_v20, %v396_v21  ;;  %v561_v24 = vpop.f32.mrb[3].mxu0 }
 0x40b   :  { %v407_v26 = vmul.f32 %v440_v22, %v397_v23 }
 0x40d   :  { %v415_v27 = vadd.f32 %v441_v25, %v407_v26 }
 0x40f   :  { %416 = vst [vmem:[#allocation10] sm:$0xff] %v415_v27 }
 0x410   :  { %727 = shalt.err (!%p724_p8)
}
 0x411   :  { %s728_s21 = scalar_lea.hbm %s941_s11, 128 }
 0x412   :  { %p729_p9 = scmp.ne.s32.totalorder %s941_s11, %s728_s21  ;;  %p732_p10 = scmp.lt.u32.totalorder %s728_s21, %s941_s11 }
 0x414   :  { %p734_p11 = pnand %p732_p10, %p729_p9 }
 0x416   :  { %737 = shalt.err (!%p734_p11)
}
 0x417   :  { %426 = dma.vmem_to_hbm [thread:$0]  %s424_s19, 128, %s941_s11, [#allocation4]  }
 0x418   :  { %744 = dma.done.wait [#allocation4], 128  }
 0x419   :  { %745 = vsyncadd [#allocation4], 4294967168 }
 0x41a   :  { %430 = vsyncpa [#allocation3], 1 }
 0x41b   :  { %431 = vsyncpa [#allocation6], 1 }
 0x41c   :  { %432 = vsyncpa [#allocation9], 1 }
 0x41d   :  { %433 = vsyncpa [#allocation4], 1 }

// kernel: tpu_custom_call.1
= control target key start
LH: loop header
LB: loop body
LE: loop exit
PB: predicated region body
PF: predicated region fallthrough
CT: control target
= control target key end

     0   :  { %16 = vsyncpa [#allocation3], 0  ;;  %s930_s0 = inlined_call_operand.hbm [shape: f32[8,32], index: 0, kind: input, shape index: {}]   ;;  %s931_s1 = inlined_call_operand.vmem [shape: f32[1,32], index: 1, kind: input, shape index: {}]   ;;  %s932_s2 = inlined_call_operand.vmem [shape: f32[1,32], index: 2, kind: input, shape index: {}]   ;;  %s933_s3 = inlined_call_operand.vmem [shape: f32[1,128], index: 3, kind: input, shape index: {}]   ;;  %s934_s4 = inlined_call_operand.vmem [shape: f32[1,128], index: 4, kind: input, shape index: {}]   ;;  %s935_s5 = inlined_call_operand.hbm [shape: f32[32,128], index: 5, kind: input, shape index: {}]   ;;  %s936_s6 = inlined_call_operand.vmem [shape: f32[1,128], index: 6, kind: input, shape index: {}]   ;;  %s937_s7 = inlined_call_operand.hbm [shape: f32[128,128], index: 7, kind: input, shape index: {}]   ;;  %s938_s8 = inlined_call_operand.vmem [shape: f32[1,128], index: 8, kind: input, shape index: {}]   ;;  %s939_s9 = inlined_call_operand.hbm [shape: f32[128,128], index: 9, kind: input, shape index: {}]   ;;  %s940_s10 = inlined_call_operand.vmem [shape: f32[1,128], index: 10, kind: input, shape index: {}]   ;;  %s941_s11 = inlined_call_operand.hbm [shape: f32[8,128], index: 11, kind: output, shape index: {}]  }
   0x1   :  { %17 = vsyncpa [#allocation6], 0 }
   0x2   :  { %18 = vsyncpa [#allocation9], 0 }
   0x3   :  { %19 = vsyncpa [#allocation4], 0  ;;  %s746_s17 = smov [#allocation5]   ;;  %s628_s21 = scalar_lea.hbm %s935_s5, 512 }
   0x4   :  { %s43_s18 = sshll.u32 %s746_s17, 4  ;;  %p629_p0 = scmp.ne.s32.totalorder %s935_s5, %s628_s21  ;;  %s44_s18 = int_to_ptr.vmem [resolvable:$true] %s43_s18 }
   0x5   :  { %p632_p1 = scmp.lt.u32.totalorder %s628_s21, %s935_s5 }
   0x7   :  { %p634_p2 = pnand %p632_p1, %p629_p0 }
   0x9   :  { %637 = shalt.err (!%p634_p2)
}
   0xa   :  { %s638_s26 = scalar_lea.vmem %s44_s18, 512  ;;  %p643_p4 = scmp.lt.s32.totalorder %s44_s18, %s44_s18 }
   0xb   :  { %p639_p3 = scmp.ne.s32.totalorder %s44_s18, %s638_s26  ;;  %p644_p5 = scmp.lt.s32.totalorder %s638_s26, %s638_s26 }
   0xd   :  { %p645_p6 = por %p644_p5, %p643_p4 }
   0xf   :  { %p646_p7 = pnand %p645_p6, %p639_p3 }
  0x11   :  { %649 = shalt.err (!%p646_p7)
}
  0x12   :  { %s747_s27 = smov 128   ;;  %s748_s28 = smov 8  }
  0x13   :  { %49 = dma.hbm_to_vmem [thread:$0]  %s935_s5, 512, %s44_s18, [#allocation6], %s747_s27, %s747_s27, %s748_s28  }
  0x14   :  { %s749_s12 = smov [#allocation2]   ;;  %s750_s14 = smov [#allocation7]  }
  0x15   :  { %s26_s13 = sshll.u32 %s749_s12, 4  ;;  %s57_s15 = sshll.u32 %s750_s14, 4  ;;  %s27_s13 = int_to_ptr.vmem [resolvable:$true] %s26_s13  ;;  %s58_s15 = int_to_ptr.vmem [resolvable:$true] %s57_s15 }
  0x16   :  { %s650_s19 = scalar_lea.hbm %s930_s0, 128 }
  0x17   :  { %p651_p8 = scmp.ne.s32.totalorder %s930_s0, %s650_s19  ;;  %p654_p9 = scmp.lt.u32.totalorder %s650_s19, %s930_s0 }
  0x19   :  { %p656_p10 = pnand %p654_p9, %p651_p8 }
  0x1b   :  { %659 = shalt.err (!%p656_p10)
}
  0x1c   :  { %s660_s5 = scalar_lea.vmem %s27_s13, 128  ;;  %p665_p12 = scmp.lt.s32.totalorder %s27_s13, %s27_s13 }
  0x1d   :  { %p661_p11 = scmp.ne.s32.totalorder %s27_s13, %s660_s5  ;;  %p666_p13 = scmp.lt.s32.totalorder %s660_s5, %s660_s5 }
  0x1f   :  { %p667_p0 = por %p666_p13, %p665_p12 }
  0x21   :  { %p668_p1 = pnand %p667_p0, %p661_p11 }
  0x23   :  { %671 = shalt.err (!%p668_p1)
}
  0x24   :  { %29 = dma.hbm_to_vmem [thread:$0]  %s930_s0, 128, %s27_s13, [#allocation3]  }
  0x25   :  { %s672_s29 = scalar_lea.hbm %s937_s7, 2048 }
  0x26   :  { %p673_p2 = scmp.ne.s32.totalorder %s937_s7, %s672_s29  ;;  %p676_p3 = scmp.lt.u32.totalorder %s672_s29, %s937_s7 }
  0x28   :  { %p678_p4 = pnand %p676_p3, %p673_p2 }
  0x2a   :  { %681 = shalt.err (!%p678_p4)
}
  0x2b   :  { %s682_s17 = scalar_lea.vmem %s58_s15, 2048  ;;  %p687_p6 = scmp.lt.s32.totalorder %s58_s15, %s58_s15 }
  0x2c   :  { %p683_p5 = scmp.ne.s32.totalorder %s58_s15, %s682_s17  ;;  %p688_p7 = scmp.lt.s32.totalorder %s682_s17, %s682_s17 }
  0x2e   :  { %p689_p8 = por %p688_p7, %p687_p6 }
  0x30   :  { %p690_p9 = pnand %p689_p8, %p683_p5 }
  0x32   :  { %693 = shalt.err (!%p690_p9)
}
  0x33   :  { %63 = dma.hbm_to_vmem [thread:$0]  %s937_s7, 2048, %s58_s15, [#allocation6], %s747_s27, %s747_s27, %s748_s28  }
  0x34   :  { %s751_s19 = smov [#allocation8]   ;;  %s694_s23 = scalar_lea.hbm %s939_s9, 2048 }
  0x35   :  { %s71_s20 = sshll.u32 %s751_s19, 4  ;;  %p695_p10 = scmp.ne.s32.totalorder %s939_s9, %s694_s23  ;;  %s72_s20 = int_to_ptr.vmem [resolvable:$true] %s71_s20 }
  0x36   :  { %p698_p11 = scmp.lt.u32.totalorder %s694_s23, %s939_s9 }
  0x38   :  { %p700_p12 = pnand %p698_p11, %p695_p10 }
  0x3a   :  { %703 = shalt.err (!%p700_p12)
}
  0x3b   :  { %s704_s26 = scalar_lea.vmem %s72_s20, 2048  ;;  %p709_p0 = scmp.lt.s32.totalorder %s72_s20, %s72_s20 }
  0x3c   :  { %p705_p13 = scmp.ne.s32.totalorder %s72_s20, %s704_s26  ;;  %p710_p1 = scmp.lt.s32.totalorder %s704_s26, %s704_s26 }
  0x3e   :  { %p711_p2 = por %p710_p1, %p709_p0 }
  0x40   :  { %p712_p3 = pnand %p711_p2, %p705_p13 }
  0x42   :  { %715 = shalt.err (!%p712_p3)
}
  0x43   :  { %77 = dma.hbm_to_vmem [thread:$0]  %s939_s9, 2048, %s72_s20, [#allocation9], %s747_s27, %s747_s27, %s748_s28  }
  0x44   :  { %738 = dma.done.wait [#allocation3], 128  }
  0x45   :  { %739 = vsyncadd [#allocation3], 4294967168 }
  0x46   :  { %740 = dma.done.wait [#allocation6], 2560  }
  0x47   :  { %741 = vsyncadd [#allocation6], 4294964736 }
  0x48   :  { %742 = dma.done.wait [#allocation9], 2048  }
  0x49   :  { %743 = vsyncadd [#allocation9], 4294965248  ;;  %vm93_vm0 = vcmask 261120   ;;  %v92_v0 = vld [vmem:[#allocation2] sm:$0xff]  ;;  %v124_v7 = vld [vmem:[#allocation5] sm:$0xff]  ;;  %v752_v10 = vmov 0.0|0.0  }
  0x4a   :  { %v94_v1 = vsel %vm93_vm0, %v92_v0, 0.0  ;;  %v125_v8 = vld [vmem:[#allocation5 + $0x8] sm:$0xff]  ;;  %v126_v9 = vld [vmem:[#allocation5 + $0x10] sm:$0xff]  ;;  %562 = vmatprep.subr.bf16.mxu0 %v752_v10  ;;  %v127_v12 = vld [vmem:[#allocation5 + $0x18] sm:$0xff]  ;;  %vm753_vm1 = vmmov 0   ;;  %v754_v13 = vmov 0.0   ;;  %568 = vmatprep.subr.bf16.mxu1 %v752_v10 }
  0x4b   :  { %95 = vadd.xlane.f32.xlu0 %v94_v1  ;;  %v563_v11 = vpack.c.bf16 %v125_v8, %v124_v7  ;;  %489 = vmatprep.mubr.msk.f32.mxu0 %vm753_vm1, %v754_v13  ;;  %v566_v14 = vpack.c.bf16 %v127_v12, %v126_v9  ;;  %v211_v15 = vld [vmem:[#allocation7] sm:$0xff]  ;;  %v212_v16 = vld [vmem:[#allocation7 + $0x8] sm:$0xff]  ;;  %v213_v17 = vld [vmem:[#allocation7 + $0x10] sm:$0xff]  ;;  %s755_s13 = smov [#allocation10]  }
  0x4c   :  { %524 = vmatprep.mubr.msk.f32.mxu1 %vm753_vm1, %v754_v13  ;;  %v569_v18 = vpack.c.bf16 %v212_v16, %v211_v15  ;;  %v214_v19 = vld [vmem:[#allocation7 + $0x18] sm:$0xff]  ;;  %v215_v21 = vld [vmem:[#allocation7 + $0x20] sm:$0xff]  ;;  %v216_v22 = vld [vmem:[#allocation7 + $0x28] sm:$0xff]  ;;  %s423_s19 = sshll.u32 %s755_s13, 4  ;;  %s424_s19 = int_to_ptr.vmem [resolvable:$true] %s423_s19 }
  0x4d   :  { %564 = vmatpush3.bf16.msra.mxu0 %v563_v11  ;;  %v572_v20 = vpack.c.bf16 %v214_v19, %v213_v17  ;;  %v575_v23 = vpack.c.bf16 %v216_v22, %v215_v21  ;;  %v217_v24 = vld [vmem:[#allocation7 + $0x30] sm:$0xff]  ;;  %v218_v25 = vld [vmem:[#allocation7 + $0x38] sm:$0xff]  ;;  %v219_v27 = vld [vmem:[#allocation7 + $0x40] sm:$0xff]  ;;  %s716_s20 = scalar_lea.vmem %s424_s19, 128  ;;  %p721_p5 = scmp.lt.s32.totalorder %s424_s19, %s424_s19 }
  0x4e   :  { %565 = vmatprep.subr.bf16.mxu0 %v752_v10  ;;  %570 = vmatpush3.bf16.msra.mxu1 %v569_v18  ;;  %v578_v26 = vpack.c.bf16 %v218_v25, %v217_v24  ;;  %v220_v28 = vld [vmem:[#allocation7 + $0x48] sm:$0xff]  ;;  %v221_v30 = vld [vmem:[#allocation7 + $0x50] sm:$0xff]  ;;  %v222_v31 = vld [vmem:[#allocation7 + $0x58] sm:$0xff]  ;;  %p717_p4 = scmp.ne.s32.totalorder %s424_s19, %s716_s20  ;;  %p722_p6 = scmp.lt.s32.totalorder %s716_s20, %s716_s20 }
  0x4f   :  { %571 = vmatprep.subr.bf16.mxu1 %v752_v10  ;;  %v581_v29 = vpack.c.bf16 %v220_v28, %v219_v27  ;;  %v584_v32 = vpack.c.bf16 %v222_v31, %v221_v30  ;;  %v223_v33 = vld [vmem:[#allocation7 + $0x60] sm:$0xff]  ;;  %v224_v34 = vld [vmem:[#allocation7 + $0x68] sm:$0xff]  ;;  %v434_v40 = vld [vmem:[%s931_s1] ss:$0 sm:$0xff] }
  0x50   :  { %v587_v35 = vpack.c.bf16 %v224_v34, %v223_v33  ;;  %v435_v42 = vld [vmem:[%s932_s2] ss:$0 sm:$0xff]  ;;  %v225_v45 = vld [vmem:[#allocation7 + $0x70] sm:$0xff]  ;;  %v307_v48 = vld [vmem:[#allocation8] sm:$0xff]  ;;  %p723_p7 = por %p722_p6, %p721_p5 }
  0x51   :  { %567 = vmatpush3.bf16.msra.mxu0 %v566_v14  ;;  %v226_v46 = vld [vmem:[#allocation7 + $0x78] sm:$0xff]  ;;  %v308_v49 = vld [vmem:[#allocation8 + $0x8] sm:$0xff]  ;;  %v309_v50 = vld [vmem:[#allocation8 + $0x10] sm:$0xff] }
  0x52   :  { %592 = vmatprep.subr.bf16.mxu0 %v752_v10  ;;  %573 = vmatpush3.bf16.msra.mxu1 %v572_v20  ;;  %v590_v47 = vpack.c.bf16 %v226_v46, %v225_v45  ;;  %v593_v51 = vpack.c.bf16 %v308_v49, %v307_v48  ;;  %v310_v52 = vld [vmem:[#allocation8 + $0x18] sm:$0xff]  ;;  %v311_v54 = vld [vmem:[#allocation8 + $0x20] sm:$0xff]  ;;  %v312_v55 = vld [vmem:[#allocation8 + $0x28] sm:$0xff]  ;;  %p724_p8 = pnand %p723_p7, %p717_p4 }
  0x53   :  { %574 = vmatprep.subr.bf16.mxu1 %v752_v10  ;;  %v596_v53 = vpack.c.bf16 %v310_v52, %v309_v50  ;;  %v599_v56 = vpack.c.bf16 %v312_v55, %v311_v54  ;;  %v313_v57 = vld [vmem:[#allocation8 + $0x30] sm:$0xff]  ;;  %v314_v58 = vld [vmem:[#allocation8 + $0x38] sm:$0xff]  ;;  %v315_v60 = vld [vmem:[#allocation8 + $0x40] sm:$0xff] }
  0x54   :  { %v602_v59 = vpack.c.bf16 %v314_v58, %v313_v57  ;;  %v316_v61 = vld [vmem:[#allocation8 + $0x48] sm:$0xff]  ;;  %v317_v63 = vld [vmem:[#allocation8 + $0x50] sm:$0xff]  ;;  %v438_v15 = vld [vmem:[%s938_s8] ss:$0 sm:$0xff] }
  0x55   :  { %v605_v62 = vpack.c.bf16 %v316_v61, %v315_v60  ;;  %v321_v12 = vld [vmem:[#allocation8 + $0x70] sm:$0xff]  ;;  %v439_v20 = vld [vmem:[%s940_s10] ss:$0 sm:$0xff] }
  0x56   :  { %576 = vmatpush3.bf16.msra.mxu1 %v575_v23  ;;  %v440_v22 = vld [vmem:[%s933_s3] ss:$0 sm:$0xff] }
  0x57   :  { %577 = vmatprep.subr.bf16.mxu1 %v752_v10  ;;  %v441_v25 = vld [vmem:[%s934_s4] ss:$0 sm:$0xff] }
  0x5a   :  { %579 = vmatpush3.bf16.msra.mxu1 %v578_v26 }
  0x5b   :  { %580 = vmatprep.subr.bf16.mxu1 %v752_v10 }
  0x5e   :  { %582 = vmatpush3.bf16.msra.mxu1 %v581_v29 }
  0x5f   :  { %583 = vmatprep.subr.bf16.mxu1 %v752_v10 }
  0x62   :  { %585 = vmatpush3.bf16.msra.mxu1 %v584_v32 }
  0x63   :  { %586 = vmatprep.subr.bf16.mxu1 %v752_v10 }
  0x66   :  { %588 = vmatpush3.bf16.msra.mxu1 %v587_v35 }
  0x67   :  { %589 = vmatprep.subr.bf16.mxu1 %v752_v10 }
  0x6a   :  { %591 = vmatpush3.bf16.msra.mxu1 %v590_v47 }
  0xd8   :  { %v96_v2 = vpop.xlane.xlu0 %95 }
  0xd9   :  { %v98_v3 = vmul.f32 0.03125, %v96_v2  ;;  %v319_v2 = vld [vmem:[#allocation8 + $0x60] sm:$0xff] }
  0xdb   :  { %v99_v4 = vsub.f32 %v92_v0, %v98_v3  ;;  %v318_v0 = vld [vmem:[#allocation8 + $0x58] sm:$0xff]  ;;  %v320_v3 = vld [vmem:[#allocation8 + $0x68] sm:$0xff] }
  0xdc   :  { %v608_v1 = vpack.c.bf16 %v318_v0, %v317_v63 }
  0xdd   :  { %v100_v5 = vmul.f32 %v99_v4, %v99_v4 }
  0xdf   :  { %v101_v6 = vsel %vm93_vm0, %v100_v5, 0.0  ;;  %v436_v5 = vld [vmem:[%s936_s6] ss:$0 sm:$0xff] }
  0xe0   :  { %102 = vadd.xlane.f32.xlu0 %v101_v6 }
 0x16d   :  { %v103_v36 = vpop.xlane.xlu0 %102 }
 0x16e   :  { %v104_v37 = vmul.f32 0.03125, %v103_v36 }
 0x170   :  { %v105_v38 = vadd.f32 1e-05, %v104_v37 }
 0x172   :  { %626 = vrsqrt.f32 %v105_v38 }
 0x17c   :  { %v627_v39 = vpop.eup %626 }
 0x17d   :  { %v107_v41 = vmul.f32 %v627_v39, %v99_v4  ;;  %v611_v4 = vpack.c.bf16 %v320_v3, %v319_v2 }
 0x17f   :  { %v115_v43 = vmul.f32 %v434_v40, %v107_v41 }
 0x181   :  { %v123_v44 = vadd.f32 %v435_v42, %v115_v43 }
 0x183   :  { %490 = vmatmul.mubr.msk.f32.vlgmr.msra.gmra.mrb[0].mxu0 %vm93_vm0, %v123_v44 }
 0x184   :  { %559 = vmatprep.mubr.msk.f32.mxu0 %vm753_vm1, %v754_v13  ;;  %594 = vmatpush3.bf16.msra.mxu0 %v593_v51  ;;  %v322_v13 = vld [vmem:[#allocation8 + $0x78] sm:$0xff] }
 0x185   :  { %595 = vmatprep.subr.bf16.mxu0 %v752_v10  ;;  %v614_v14 = vpack.c.bf16 %v322_v13, %v321_v12 }
 0x188   :  { %597 = vmatpush3.bf16.msra.mxu0 %v596_v53 }
 0x189   :  { %598 = vmatprep.subr.bf16.mxu0 %v752_v10 }
 0x18c   :  { %600 = vmatpush3.bf16.msra.mxu0 %v599_v56 }
 0x18d   :  { %601 = vmatprep.subr.bf16.mxu0 %v752_v10 }
 0x190   :  { %603 = vmatpush3.bf16.msra.mxu0 %v602_v59 }
 0x191   :  { %604 = vmatprep.subr.bf16.mxu0 %v752_v10 }
 0x194   :  { %606 = vmatpush3.bf16.msra.mxu0 %v605_v62 }
 0x195   :  { %607 = vmatprep.subr.bf16.mxu0 %v752_v10 }
 0x198   :  { %609 = vmatpush3.bf16.msra.mxu0 %v608_v1 }
 0x199   :  { %610 = vmatprep.subr.bf16.mxu0 %v752_v10 }
 0x19c   :  { %612 = vmatpush3.bf16.msra.mxu0 %v611_v4 }
 0x19d   :  { %613 = vmatprep.subr.bf16.mxu0 %v752_v10 }
 0x1a0   :  { %615 = vmatpush3.bf16.msra.mxu0 %v614_v14 }
 0x256   :  { %v204_v6 = vpop.f32.mrb[0].mxu0 }
 0x257   :  { %v205_v7 = vadd.f32 %v436_v5, %v204_v6  ;;  %v491_v8 = vpop.f32.mrb[1].mxu0 }
 0x259   :  { %v209_v9 = vmul.f32 0.01, %v205_v7  ;;  %vm208_vm2 = vcmp.gt.f32.partialorder %v205_v7, 0.0 }
 0x25b   :  { %v210_v11 = vsel %vm208_vm2, %v205_v7, %v209_v9 }
 0x25c   :  { %525 = vmatmul.mubr.f32.vlgmr.msra.gmra.mrb[0].mxu1 %v210_v11 }
 0x32f   :  { %v300_v10 = vpop.f32.mrb[0].mxu1 }
 0x330   :  { %v301_v16 = vadd.f32 %v438_v15, %v300_v10  ;;  %v526_v17 = vpop.f32.mrb[1].mxu1 }
 0x332   :  { %vm304_vm3 = vcmp.gt.f32.partialorder %v301_v16, 0.0  ;;  %v305_v18 = vmul.f32 0.01, %v301_v16 }
 0x334   :  { %v306_v19 = vsel %vm304_vm3, %v301_v16, %v305_v18 }
 0x335   :  { %560 = vmatmul.mubr.f32.vlgmr.msra.gmra.mrb[2].mxu0 %v306_v19 }
 0x408   :  { %v396_v21 = vpop.f32.mrb[2].mxu0 }
 0x409   :  { %v397_v23 = vadd.f32 %v439_v20, %v396_v21  ;;  %v561_v24 = vpop.f32.mrb[3].mxu0 }
 0x40b   :  { %v407_v26 = vmul.f32 %v440_v22, %v397_v23 }
 0x40d   :  { %v415_v27 = vadd.f32 %v441_v25, %v407_v26 }
 0x40f   :  { %416 = vst [vmem:[#allocation10] sm:$0xff] %v415_v27 }
 0x410   :  { %727 = shalt.err (!%p724_p8)
}
 0x411   :  { %s728_s21 = scalar_lea.hbm %s941_s11, 128 }
 0x412   :  { %p729_p9 = scmp.ne.s32.totalorder %s941_s11, %s728_s21  ;;  %p732_p10 = scmp.lt.u32.totalorder %s728_s21, %s941_s11 }
 0x414   :  { %p734_p11 = pnand %p732_p10, %p729_p9 }
 0x416   :  { %737 = shalt.err (!%p734_p11)
}
 0x417   :  { %426 = dma.vmem_to_hbm [thread:$0]  %s424_s19, 128, %s941_s11, [#allocation4]  }
 0x418   :  { %744 = dma.done.wait [#allocation4], 128  }
 0x419   :  { %745 = vsyncadd [#allocation4], 4294967168 }
 0x41a   :  { %430 = vsyncpa [#allocation3], 1 }
 0x41b   :  { %431 = vsyncpa [#allocation6], 1 }
 0x41c   :  { %432 = vsyncpa [#allocation9], 1 }
 0x41d   :  { %433 = vsyncpa [#allocation4], 1 }

</bundles_post_ra>
